<compile_context>
chip_gen: v5e
topology: v5e:2x2
jax: 0.10.0
libtpu: 0.0.40
codegen_flags: <defaults>
</compile_context>

<pallas_src>
import functools

import numpy as np
import jax
import jax.numpy as jnp
from jax.experimental import pallas as pl
from jax.experimental.pallas import tpu as pltpu


def _round_up(v, m):
    return (v + m - 1) // m * m


def _device_kind():
    try:
        return jax.devices()[0].device_kind.lower()
    except Exception:
        return ""


@functools.lru_cache(maxsize=None)
def _roll_matches_jnp_convention(backend, device_kind):
    """Tiny probe kernel pinning down pltpu.roll's shift direction.

    Cached per (backend, device_kind) so mixing backends can't reuse a stale
    result.  jnp.roll convention: out[i] = in[i - shift] -> out[0] == n - 1.
    """
    del backend, device_kind  # cache key only
    n = 256

    def k(x_ref, o_ref):
        o_ref[...] = pltpu.roll(x_ref[...], 1, 1)

    x = jax.lax.broadcasted_iota(jnp.float32, (8, n), 1)
    y = pl.pallas_call(k, out_shape=jax.ShapeDtypeStruct((8, n), jnp.float32))(x)
    return bool(y[0, 0] == n - 1)


def _scconv_kernel(x_ref, cvec_ref, grp_ref, w_sq1_ref, w_sq2_ref, w_gwc_ref,
                   w_pwc2aug_ref, mask_ref, o_ref, stacked_ref,
                   *, C, cpg, S, up_c, NB, cin_pad, shifts, thr, eps):
    f32 = jnp.float32
    mxu = w_sq1_ref.dtype                  # bf16 (default) or f32 MXU operands
    half = C // 2
    n = cpg * S
    inv_n = 1.0 / n
    inv_nm1 = 1.0 / (n - 1)
    inv_s = 1.0 / S

    gw = cvec_ref[:, 0:1]                  # gamma * w_gamma   (precomputed)
    bw = cvec_ref[:, 1:2]                  # beta  * w_gamma   (precomputed)
    b_gwc = cvec_ref[:, 2:3]

    masks_all = mask_ref[...]              # (K*K, S) f32 border masks
    mrows = [masks_all[t:t + 1] for t in range(len(shifts))]

    for i in range(NB):                    # statically unrolled batch block
        x = x_ref[i].astype(f32)           # (C, S)

        # ---------------- SRU: group stats + folded gate ----------------
        row_sum = jnp.sum(x, axis=1, keepdims=True)          # (C, 1)
        row_sq = jnp.sum(x * x, axis=1, keepdims=True)       # (C, 1)
        if cpg == 1:
            gsum, gsq = row_sum, row_sq
        else:
            stats = jnp.concatenate([row_sum, row_sq], axis=1)        # (C, 2)
            agg = jnp.dot(grp_ref[...], stats, preferred_element_type=f32)
            gsum, gsq = agg[:, 0:1], agg[:, 1:2]
        mean = gsum * inv_n
        var = jnp.maximum(gsq - gsum * mean, 0.0) * inv_nm1   # unbiased (torch.std)
        std = jnp.sqrt(var)
        a = gw / (std + eps)                                  # (C, 1)
        bias = bw - mean * a                                  # (C, 1)
        # info == (sigmoid(gn_x * w_gamma) >= gate_threshold)
        info = (x * a + bias) >= thr

        # reconstruct directly from half-slices (no full x1/x2 temporaries)
        x_t, x_b = x[:half], x[half:]
        i_t, i_b = info[:half], info[half:]
        sru_top = jnp.where(i_t, x_t, 0.0) + jnp.where(i_b, 0.0, x_b)
        sru_bot = jnp.where(i_b, x_b, 0.0) + jnp.where(i_t, 0.0, x_t)
        if up_c == half:                   # alpha == 0.5 fast path, no concat
            up, low = sru_top, sru_bot
        else:
            x_sru = jnp.concatenate([sru_top, sru_bot], axis=0)
            up, low = x_sru[:up_c], x_sru[up_c:]

        # ---------------- CRU ----------------
        up_s = jnp.dot(w_sq1_ref[...], up.astype(mxu),
                       preferred_element_type=f32)            # (cin_pad, S)
        low_s = jnp.dot(w_sq2_ref[...], low.astype(mxu),
                        preferred_element_type=f32)           # (low_cr_pad, S)

        # GWC 3x3 grouped conv: per-tap lane roll (XLU) + border mask, written
        # straight into the (K*K*cin_pad, S) VMEM scratch (cast fused into the
        # store), then one MXU matmul.  PWC1 is already folded into the centre
        # tap of w_gwc, so no separate PWC1 matmul/add.
        for t, sh in enumerate(shifts):
            rolled = up_s if sh == 0 else pltpu.roll(up_s, sh, 1)
            stacked_ref[pl.ds(t * cin_pad, cin_pad), :] = (
                rolled * mrows[t]).astype(stacked_ref.dtype)

        y1 = jnp.dot(w_gwc_ref[...], stacked_ref[...],
                     preferred_element_type=f32) + b_gwc
        # y2 = concat([PWC2(low_s), low_s]) via identity-augmented weights.
        y2 = jnp.dot(w_pwc2aug_ref[...], low_s.astype(mxu),
                     preferred_element_type=f32)

        # AdaptiveAvgPool2d(1) + 2C-channel softmax + rescale, no (2C,S) concat.
        avg1 = jnp.sum(y1, axis=1, keepdims=True) * inv_s     # (C, 1)
        avg2 = jnp.sum(y2, axis=1, keepdims=True) * inv_s
        m = jnp.maximum(jnp.max(avg1, axis=0, keepdims=True),
                        jnp.max(avg2, axis=0, keepdims=True))
        e1 = jnp.exp(avg1 - m)
        e2 = jnp.exp(avg2 - m)
        denom = (jnp.sum(e1, axis=0, keepdims=True)
                 + jnp.sum(e2, axis=0, keepdims=True))
        soft1 = e1 / denom
        soft2 = e2 / denom
        o_ref[i] = (soft1 * y1 + soft2 * y2).astype(o_ref.dtype)


def init_scconv_params(key, op_channel, *, alpha=0.5, squeeze_ratio=2,
                       group_size=2, group_kernel_size=3):
    up_c = int(alpha * op_channel)
    low_c = op_channel - up_c
    r = squeeze_ratio
    K = group_kernel_size
    ks = jax.random.split(key, 7)

    gamma = jax.random.normal(ks[0], (op_channel,), jnp.float32)   # torch.randn
    beta = jnp.zeros((op_channel,), jnp.float32)                   # torch.zeros

    w_sq1 = jax.random.normal(ks[1], (up_c // r, up_c), jnp.float32) * 0.2
    w_sq2 = jax.random.normal(ks[2], (low_c // r, low_c), jnp.float32) * 0.2

    cin = up_c // r
    cin_g = cin // group_size
    cout_g = op_channel // group_size
    w_gwc_grp = jax.random.normal(ks[3], (op_channel, cin_g, K, K), jnp.float32) * 0.2
    # expand grouped weights into dense (O, cin, K, K) with zeros off-group
    w_gwc_dense = jnp.zeros((op_channel, cin, K, K), jnp.float32)
    for g in range(group_size):
        w_gwc_dense = w_gwc_dense.at[g * cout_g:(g + 1) * cout_g,
                                     g * cin_g:(g + 1) * cin_g].set(
            w_gwc_grp[g * cout_g:(g + 1) * cout_g])
    b_gwc = jax.random.normal(ks[4], (op_channel,), jnp.float32) * 0.1

    w_pwc1 = jax.random.normal(ks[5], (op_channel, cin), jnp.float32) * 0.2
    w_pwc2 = jax.random.normal(ks[6], (op_channel - low_c // r, low_c // r),
                               jnp.float32) * 0.2
    return dict(gamma=gamma, beta=beta, w_sq1=w_sq1, w_sq2=w_sq2,
                w_gwc_dense=w_gwc_dense, b_gwc=b_gwc,
                w_pwc1=w_pwc1, w_pwc2=w_pwc2)


def _pick_batch_block(N, C, S, io_bytes):
    """Batch elements per grid step: ~2 MB of I/O per step, grid length >= 2."""
    per = 2 * C * S * io_bytes
    nb = max(1, (1 << 21) // per)
    if N >= 2:
        nb = min(nb, N // 2)          # keep >= 2 grid steps (v7x has 2 TCs)
    nb = int(min(nb, N))
    while N % nb:                     # keep it a divisor of N (no padding)
        nb -= 1
    return max(nb, 1)


def _vmem_limit(C, S, K, cin_pad, low_cr_pad, NB, io_bytes, mxu_bytes, use_grp):
    kind = _device_kind()
    physical = 64 * 1024 * 1024 if "v7" in kind else 128 * 1024 * 1024
    budget = int(physical * 0.625)    # 40 MiB on v7x, 80 MiB on v5e/v6e
    live = (8 * C + 2 * (cin_pad + low_cr_pad)) * S * 4          # f32 temps
    live += (K * K * cin_pad) * S * mxu_bytes                    # tap scratch
    weights = (C * 3 * 4
               + (cin_pad * C + low_cr_pad * C + C * K * K * cin_pad
                  + C * low_cr_pad) * mxu_bytes
               + (C * C * 4 if use_grp else 8 * 128 * 4)
               + K * K * S * 4) * 2                              # double-buffered
    io = 2 * NB * 2 * C * S * io_bytes
    est = 2 * live + weights + io + (2 << 20)
    return int(min(max(est, 16 * 1024 * 1024), budget))


def scconv_forward(x, params, *, group_num=16, gate_threshold=0.5, alpha=0.5,
                   squeeze_ratio=2, group_kernel_size=3, eps=1e-10,
                   matmul_dtype=jnp.bfloat16, io_dtype=jnp.bfloat16):
    """SCConv forward.  x: (N, C, H, W).  Best perf with H*W % 128 == 0."""
    N, C, H, W = x.shape
    S = H * W
    up_c = int(alpha * C)
    low_c = C - up_c
    r = squeeze_ratio
    K = group_kernel_size
    cin = up_c // r
    low_cr = low_c // r
    mxu_bytes = jnp.dtype(matmul_dtype).itemsize
    io_bytes = jnp.dtype(io_dtype).itemsize
    # pad squeezed channels to the native sublane tile (16 for bf16 scratch)
    cin_pad = _round_up(cin, 16 if mxu_bytes == 2 else 8)
    low_cr_pad = _round_up(low_cr, 8)
    pad = K // 2
    f32 = jnp.float32
    cpg = C // group_num

    # Per-channel constants: the GN-affine/sigmoid gate collapses to
    #   info = x * (gamma*w_gamma)/(std+eps) + (beta - mean*gamma)*w_gamma >= logit(t)
    gamma = params["gamma"].astype(f32)
    # NOTE: matches the PyTorch reference exactly (no eps guard on sum(gamma)).
    w_gamma = gamma / jnp.sum(gamma)
    cvec = jnp.stack([gamma * w_gamma,
                      params["beta"].astype(f32) * w_gamma,
                      params["b_gwc"].astype(f32)], axis=1)            # (C, 3)

    t = float(gate_threshold)
    if t <= 0.0:
        thr = -float("inf")
    elif t >= 1.0:
        thr = float("inf")
    else:
        thr = float(np.log(t / (1.0 - t)))

    # same-group indicator matrix; only read when channels-per-group > 1.
    use_grp = cpg > 1
    if use_grp:
        g_idx = np.arange(C) // cpg
        grp_arr = jnp.asarray((g_idx[:, None] == g_idx[None, :]).astype(np.float32))
    else:
        grp_arr = jnp.zeros((8, 128), f32)     # dummy, never read

    # Squeeze / pointwise weights, zero-padded so squeezed channel counts stay
    # native-tile aligned.
    w_sq1 = jnp.zeros((cin_pad, up_c), f32).at[:cin].set(params["w_sq1"])
    w_sq2 = jnp.zeros((low_cr_pad, low_c), f32).at[:low_cr].set(params["w_sq2"])
    w_pwc2aug = jnp.zeros((C, low_cr_pad), f32)
    w_pwc2aug = w_pwc2aug.at[:C - low_cr, :low_cr].set(params["w_pwc2"])
    w_pwc2aug = w_pwc2aug.at[C - low_cr:, :low_cr].set(jnp.eye(low_cr, dtype=f32))

    # GWC weights flattened over (tap, in-channel); PWC1 folded into the centre
    # tap (its stacked block is exactly up_s since the centre mask is all-ones).
    w_taps = jnp.transpose(params["w_gwc_dense"], (2, 3, 0, 1)).reshape(K * K, C, cin)
    center = (K // 2) * K + (K // 2)
    w_taps = w_taps.at[center].add(params["w_pwc1"].astype(f32))
    w_taps = jnp.pad(w_taps, ((0, 0), (0, 0), (0, cin_pad - cin)))
    w_gwc = jnp.transpose(w_taps, (1, 0, 2)).reshape(C, K * K * cin_pad)

    # Per-tap static circular-shift amounts + zero-padding border masks.
    jnp_conv = _roll_matches_jnp_convention(jax.default_backend(), _device_kind())
    hh, ww_ = np.divmod(np.arange(S), W)
    shifts = []
    masks = np.zeros((K * K, S), np.float32)
    for dy in range(K):
        for dx in range(K):
            ti = dy * K + dx
            delta = (dy - pad) * W + (dx - pad)
            shifts.append(int((-delta) % S) if jnp_conv else int(delta % S))
            sh = hh + dy - pad
            sw = ww_ + dx - pad
            masks[ti] = ((sh >= 0) & (sh < H) & (sw >= 0) & (sw < W)).astype(np.float32)
    masks = jnp.asarray(masks)

    # MXU operands in bf16 (default); GN / gating / softmax math stays f32.
    w_sq1, w_sq2, w_gwc, w_pwc2aug = [
        a.astype(matmul_dtype) for a in (w_sq1, w_sq2, w_gwc, w_pwc2aug)]

    NB = _pick_batch_block(N, C, S, io_bytes)
    x_flat = x.reshape(N, C, S).astype(io_dtype)

    kernel = functools.partial(
        _scconv_kernel, C=C, cpg=cpg, S=S, up_c=up_c, NB=NB, cin_pad=cin_pad,
        shifts=tuple(shifts), thr=thr, eps=eps)

    def full(shape):
        return pl.BlockSpec(shape, lambda n, _nd=len(shape): (0,) * _nd)

    out = pl.pallas_call(
        kernel,
        out_shape=jax.ShapeDtypeStruct((N, C, S), io_dtype),
        grid=(N // NB,),
        in_specs=[
            pl.BlockSpec((NB, C, S), lambda n: (n, 0, 0)),
            full(cvec.shape), full(grp_arr.shape),
            full(w_sq1.shape), full(w_sq2.shape), full(w_gwc.shape),
            full(w_pwc2aug.shape), full(masks.shape),
        ],
        out_specs=pl.BlockSpec((NB, C, S), lambda n: (n, 0, 0)),
        scratch_shapes=[pltpu.VMEM((K * K * cin_pad, S), matmul_dtype)],
        compiler_params=pltpu.CompilerParams(
            dimension_semantics=("parallel",),
            vmem_limit_bytes=_vmem_limit(C, S, K, cin_pad, low_cr_pad, NB,
                                         io_bytes, mxu_bytes, use_grp)),
    )(x_flat, cvec, grp_arr, w_sq1, w_sq2, w_gwc, w_pwc2aug, masks)
    return out.reshape(N, C, H, W)


def scconv_reference(x, params, *, group_num=16, gate_threshold=0.5, alpha=0.5,
                     squeeze_ratio=2, group_kernel_size=3, eps=1e-10):
    """Pure-JAX (XLA) reference mirroring the PyTorch module, f32 highest precision."""
    N, C, H, W = x.shape
    G = group_num
    hp = jax.lax.Precision.HIGHEST
    xg = x.reshape(N, G, -1)
    mean = jnp.mean(xg, axis=2, keepdims=True)
    var = jnp.sum((xg - mean) ** 2, axis=2, keepdims=True) / (xg.shape[2] - 1)
    std = jnp.sqrt(var)
    xn = ((xg - mean) / (std + eps)).reshape(N, C, H, W)
    gamma = params["gamma"].reshape(1, C, 1, 1)
    beta = params["beta"].reshape(1, C, 1, 1)
    gn_x = xn * gamma + beta
    w_gamma = gamma / jnp.sum(params["gamma"])
    rew = 1.0 / (1.0 + jnp.exp(-(gn_x * w_gamma)))
    info = rew >= gate_threshold
    x1 = jnp.where(info, x, 0.0)
    x2 = jnp.where(info, 0.0, x)
    half = C // 2
    xr = jnp.concatenate([x1[:, :half] + x2[:, half:],
                          x1[:, half:] + x2[:, :half]], axis=1)

    up_c = int(alpha * C)
    up, low = xr[:, :up_c], xr[:, up_c:]
    conv1x1 = lambda w, t: jnp.einsum("oi,nihw->nohw", w, t, precision=hp)
    up_s = conv1x1(params["w_sq1"], up)
    low_s = conv1x1(params["w_sq2"], low)
    gwc = jax.lax.conv_general_dilated(
        up_s, params["w_gwc_dense"], (1, 1), "SAME",
        dimension_numbers=("NCHW", "OIHW", "NCHW"), precision=hp)
    y1 = gwc + params["b_gwc"].reshape(1, C, 1, 1) + conv1x1(params["w_pwc1"], up_s)
    y2 = jnp.concatenate([conv1x1(params["w_pwc2"], low_s), low_s], axis=1)
    out = jnp.concatenate([y1, y2], axis=1)
    avg = jnp.mean(out, axis=(2, 3), keepdims=True)
    soft = jax.nn.softmax(avg, axis=1)
    out = soft * out
    return out[:, :C] + out[:, C:]


if __name__ == "__main__":
    key = jax.random.PRNGKey(0)
    k_x, k_p, k_x2, k_p2 = jax.random.split(key, 4)

    # Config 1: C=16, group_num=16 (cpg==1 fast path), S=256 lane-dense.
    N, C, H, W = 2, 16, 16, 16
    x = jax.random.normal(k_x, (N, C, H, W), jnp.float32)
    params = init_scconv_params(k_p, C)

    ref = scconv_reference(x, params)
    out_f32 = scconv_forward(x, params, matmul_dtype=jnp.float32,
                             io_dtype=jnp.float32)
    out_bf16 = scconv_forward(x, params)      # default: bf16 MXU operands + bf16 I/O
    # bf16-I/O path is checked against the reference on the bf16-quantized input
    # so the discrete gating decisions agree between kernel and reference.
    x_q = x.astype(jnp.bfloat16).astype(jnp.float32)
    ref_q = scconv_reference(x_q, params)

    # Config 2: C=32, group_num=8 (cpg==4 exercises grouped-stat aggregation).
    N2, C2, H2, W2 = 2, 32, 8, 16
    x2 = jax.random.normal(k_x2, (N2, C2, H2, W2), jnp.float32)
    params2 = init_scconv_params(k_p2, C2)
    ref2 = scconv_reference(x2, params2, group_num=8)
    out2 = scconv_forward(x2, params2, group_num=8, matmul_dtype=jnp.float32,
                          io_dtype=jnp.float32)

    out_f32, out_bf16, out2, ref, ref_q, ref2 = jax.block_until_ready(
        (out_f32, out_bf16, out2, ref, ref_q, ref2))

    def mean_rel_err(out, refv):
        out = out.astype(jnp.float32)
        scale = float(jnp.max(jnp.abs(refv))) + 1e-6
        return float(jnp.mean(jnp.abs(out - refv))) / scale

    assert out_f32.shape == (N, C, H, W) and out_bf16.shape == (N, C, H, W)
    assert out2.shape == (N2, C2, H2, W2)
    assert bool(jnp.all(jnp.isfinite(out_f32)))
    assert bool(jnp.all(jnp.isfinite(out_bf16.astype(jnp.float32))))
    assert bool(jnp.all(jnp.isfinite(out2)))

    e_f32 = mean_rel_err(out_f32, ref)
    e_bf16 = mean_rel_err(out_bf16, ref_q)
    e_grp = mean_rel_err(out2, ref2)
    assert e_f32 < 1e-2, f"f32 kernel mismatch vs reference: {e_f32}"
    assert e_bf16 < 3e-2, f"bf16 kernel mismatch vs reference: {e_bf16}"
    assert e_grp < 1e-2, f"grouped-stats kernel mismatch vs reference: {e_grp}"
    print("KERNEL_OK")
</pallas_src>

<mosaic_0001>
module attributes {stable_mosaic.version = 11 : i64} {
  func.func @k(%arg0: memref<8x256xf32, #tpu.memory_space<vmem>>, %arg1: memref<8x256xf32, #tpu.memory_space<vmem>>) attributes {dimension_semantics = [], scalar_prefetch = 0 : i64, scratch_operands = 0 : i64, tpu.core_type = #tpu.core_type<tc>} {
    %c0 = arith.constant 0 : index
    %c0_0 = arith.constant 0 : index
    %0 = vector.load %arg0[%c0, %c0_0] : memref<8x256xf32, #tpu.memory_space<vmem>>, vector<8x256xf32>
    %c1_i32 = arith.constant 1 : i32
    %1 = tpu.dynamic_rotate %0 by %c1_i32 dim 1 : vector<8x256xf32>, i32 -> vector<8x256xf32>
    %c0_1 = arith.constant 0 : index
    %c0_2 = arith.constant 0 : index
    %2 = vector.load %arg1[%c0_1, %c0_2] : memref<8x256xf32, #tpu.memory_space<vmem>>, vector<8x256xf32>
    tpu.vector_store %arg1[%c0_1, %c0_2], %1 {strides = array<i32>} : memref<8x256xf32, #tpu.memory_space<vmem>>, vector<8x256xf32>,
    return
  }
}

</mosaic_0001>

<bundles_post_ra>
// kernel: tpu_custom_call.1
= control target key start
LH: loop header
LB: loop body
LE: loop exit
PB: predicated region body
PF: predicated region fallthrough
CT: control target
= control target key end

     0   :  { %6 = vsyncpa [#allocation3], 0  ;;  %s127_s0 = inlined_call_operand.hbm [shape: f32[8,256], index: 0, kind: input, shape index: {}]   ;;  %s128_s1 = inlined_call_operand.hbm [shape: f32[8,256], index: 1, kind: output, shape index: {}]  }
   0x1   :  { %7 = vsyncpa [#allocation4], 0  ;;  %s13_s8 = sshll.u32 %s127_s0, 4  ;;  %s108_s9 = smov [#allocation2]   ;;  %s14_s8 = int_to_ptr.hbm [resolvable:$true] %s13_s8 }
   0x2   :  { %s15_s10 = sshll.u32 %s108_s9, 4  ;;  %s16_s10 = int_to_ptr.vmem [resolvable:$true] %s15_s10 }
   0x3   :  { %18 = dma.hbm_to_vmem [thread:$0]  %s14_s8, 256, %s16_s10, [#allocation3]  }
   0x4   :  { %104 = dma.done.wait [#allocation3], 256  }
   0x5   :  { %105 = vsyncadd [#allocation3], 4294967040  ;;  %v23_v0 = vld [vmem:[#allocation2] sm:$0xff]  ;;  %s109_s11 = smov 1   ;;  %v24_v1 = vld [vmem:[#allocation2 + $0x8] sm:$0xff]  ;;  %v29_v2 = vlaneseq  ;;  %s110_s12 = smov [#allocation5]  }
   0x6   :  { %25 = vrot.lane.b32.xlu0 %v23_v0, %s109_s11  ;;  %s41_s13 = sshll.u32 %s110_s12, 4  ;;  %s43_s15 = sshll.u32 %s128_s1, 4  ;;  %s42_s13 = int_to_ptr.vmem [resolvable:$true] %s41_s13  ;;  %s44_s15 = int_to_ptr.hbm [resolvable:$true] %s43_s15 }
   0x7   :  { %v30_v4 = vand.u32 127, %v29_v2 }
   0x9   :  { %vm31_vm0 = vcmp.lt.s32.totalorder %v30_v4, 1 }
   0xe   :  { %27 = vrot.lane.b32.xlu0 %v24_v1, %s109_s11 }
  0x78   :  { %v26_v3 = vpop.permute.xlu0 %25 }
  0x80   :  { %v28_v5 = vpop.permute.xlu0 %27 }
  0x81   :  { %v32_v6 = vsel %vm31_vm0, %v26_v3, %v28_v5  ;;  %v33_v7 = vsel %vm31_vm0, %v28_v5, %v26_v3 }
  0x82   :  { %34 = vst [vmem:[#allocation5] sm:$0xff] %v33_v7 }
  0x83   :  { %35 = vst [vmem:[#allocation5 + $0x8] sm:$0xff] %v32_v6 }
  0x84   :  { %46 = dma.vmem_to_hbm [thread:$0]  %s42_s13, 256, %s44_s15, [#allocation4]  }
  0x85   :  { %106 = dma.done.wait [#allocation4], 256  }
  0x86   :  { %107 = vsyncadd [#allocation4], 4294967040 }
  0x87   :  { %51 = vsyncpa [#allocation3], 1 }
  0x88   :  { %52 = vsyncpa [#allocation4], 1 }

</bundles_post_ra>
